<compile_context>
chip_gen: v7x
topology: tpu7x:2x2x1
jax: 0.10.0
libtpu: 0.0.40
codegen_flags: <defaults>
</compile_context>

<pallas_src>
import functools

import jax
import jax.numpy as jnp
from jax import lax
from jax.experimental import pallas as pl
from jax.experimental.pallas import tpu as pltpu
import numpy as np


def _round_up(x, m):
    return (x + m - 1) // m * m


def _pick_tile_m(ohw, n, requested=512):
    """Spatial (lane) tile: multiple of 128, large enough to amortize the
    ~0.35us/step overhead, but shrunk (down to 128) until the grid has >= 4
    total steps so v7x's two TensorCores both get >= 2 pipelined iterations."""
    tm = max(128, min(_round_up(requested, 128), _round_up(ohw, 128)))
    while tm > 128 and n * ((ohw + tm - 1) // tm) < 4:
        tm = max(128, _round_up(tm // 2, 128))
    return tm


def _crelu_kernel(p_ref, w_ref, b_ref, o_ref):
    # (2O, K) @ (K, TM) on the MXU (bf16 in, f32 acc) + bias + ReLU.
    # CReLU negation is pre-folded into w/b -> single lane-dense store.
    y = jnp.dot(w_ref[...], p_ref[...], preferred_element_type=jnp.float32)
    y = y + b_ref[...]                          # (2O, TM) + (2O, 1) lane-broadcast
    o_ref[...] = jnp.maximum(y, 0.0).astype(o_ref.dtype)


def crelu_pallas(patches, w2, b2, *, tile_m, out_dtype):
    """patches: (N, K, OHW_pad) bf16 channel-major im2col (per image),
    w2: (2O, K) bf16 (BN scale + CReLU negation folded),
    b2: (2O, 1) f32  ->  (N, 2O, OHW_pad) out_dtype, channel-major."""
    N, K, OHW_pad = patches.shape
    O2 = w2.shape[0]
    assert OHW_pad % tile_m == 0 and tile_m % 128 == 0

    return pl.pallas_call(
        _crelu_kernel,
        out_shape=jax.ShapeDtypeStruct((N, O2, OHW_pad), out_dtype),
        grid_spec=pltpu.PrefetchScalarGridSpec(
            num_scalar_prefetch=0,
            grid=(N, OHW_pad // tile_m),
            in_specs=[
                # K / 2O block dims equal the full array dims (legal without
                # (8,128) divisibility); lane dim is the 128-multiple tile.
                pl.BlockSpec((None, K, tile_m), lambda n, t: (n, 0, t)),
                pl.BlockSpec((O2, K), lambda n, t: (0, 0)),
                pl.BlockSpec((O2, 1), lambda n, t: (0, 0)),
            ],
            out_specs=pl.BlockSpec((None, O2, tile_m), lambda n, t: (n, 0, t)),
        ),
        compiler_params=pltpu.CompilerParams(
            dimension_semantics=("parallel", "parallel"),
        ),
    )(patches, w2, b2)


def _im2col_nkm(x_nchw, kh, kw, stride, pad, dtype):
    """x: (N,C,H,W) -> patches (N, C*KH*KW, OH*OW) in `dtype` (cast BEFORE the
    patch extraction so the whole im2col pipeline runs in bf16)."""
    N, C, H, W = x_nchw.shape
    OH = (H + 2 * pad - kh) // stride + 1
    OW = (W + 2 * pad - kw) // stride + 1
    xp = jnp.pad(x_nchw.astype(dtype), ((0, 0), (0, 0), (pad, pad), (pad, pad)))
    cols = []
    for i in range(kh):
        for j in range(kw):
            cols.append(xp[:, :, i:i + stride * OH:stride, j:j + stride * OW:stride])
    p = jnp.stack(cols, axis=2)                       # (N, C, KH*KW, OH, OW)
    p = p.reshape(N, C * kh * kw, OH * OW)            # channel-major, no transpose
    return p, OH, OW


def crelu_forward(x_nchw, weight_oihw, gamma, beta, run_mean, run_var,
                  *, stride, pad, eps=1e-5, tile_m=512, out_dtype=jnp.bfloat16):
    """Full CRelu forward. Returns NCHW output with 2*O channels (out_dtype)."""
    N, C, H, W = x_nchw.shape
    O, _, KH, KW = weight_oihw.shape
    K = C * KH * KW

    # Fold BN (inference) into per-channel affine, fold scale into W, and fold
    # the CReLU negation into a doubled weight/bias.
    scale = gamma / jnp.sqrt(run_var + eps)
    bias = beta - run_mean * scale
    w = weight_oihw.reshape(O, K) * scale[:, None]                 # (O, K) f32
    w2 = jnp.concatenate([w, -w], axis=0).astype(jnp.bfloat16)     # (2O, K)
    b2 = jnp.concatenate([bias, -bias], axis=0).reshape(2 * O, 1)  # (2O, 1) f32

    patches, OH, OW = _im2col_nkm(x_nchw, KH, KW, stride, pad, jnp.bfloat16)
    OHW = OH * OW
    tm = _pick_tile_m(OHW, N, tile_m)
    OHW_pad = _round_up(OHW, tm)
    if OHW_pad > OHW:
        patches = jnp.pad(patches, ((0, 0), (0, 0), (0, OHW_pad - OHW)))

    out = crelu_pallas(patches, w2, b2, tile_m=tm, out_dtype=out_dtype)
    if OHW_pad > OHW:
        out = out[:, :, :OHW]           # drop padded (garbage relu(+/-bias)) cols
    return out.reshape(N, 2 * O, OH, OW)  # already channel-major: free reshape


if __name__ == "__main__":
    # Small shapes consistent with the module (Conv2d kwargs: k=3, s=1, p=1).
    N, C_in, H, W = 2, 4, 16, 16
    C_out, KH, KW, stride, pad = 8, 3, 3, 1, 1

    key = jax.random.PRNGKey(0)
    kx, kw_, kg, kb, km, kv = jax.random.split(key, 6)
    x = jax.random.normal(kx, (N, C_in, H, W), jnp.float32)
    weight = jax.random.normal(kw_, (C_out, C_in, KH, KW), jnp.float32) * 0.1
    gamma = 1.0 + 0.1 * jax.random.normal(kg, (C_out,), jnp.float32)
    beta = 0.1 * jax.random.normal(kb, (C_out,), jnp.float32)
    run_mean = 0.1 * jax.random.normal(km, (C_out,), jnp.float32)
    run_var = jnp.abs(jax.random.normal(kv, (C_out,), jnp.float32)) + 0.5

    fwd = jax.jit(functools.partial(crelu_forward, stride=stride, pad=pad))
    out = fwd(x, weight, gamma, beta, run_mean, run_var)
    jax.block_until_ready(out)

    # Pure-JAX f32 reference (conv + BN-eval + cat + relu).
    y = lax.conv_general_dilated(
        x, weight, (stride, stride), ((pad, pad), (pad, pad)),
        dimension_numbers=("NCHW", "OIHW", "NCHW"))
    s = gamma / jnp.sqrt(run_var + 1e-5)
    b = beta - run_mean * s
    y = y * s[None, :, None, None] + b[None, :, None, None]
    ref = jnp.maximum(jnp.concatenate([y, -y], axis=1), 0.0)

    # bf16 inputs/weights/output (f32 accumulation) -> loose tolerance vs f32 ref.
    np.testing.assert_allclose(
        np.asarray(out.astype(jnp.float32)), np.asarray(ref), atol=5e-2, rtol=5e-2)
    assert out.shape == (N, 2 * C_out, H, W)
    print("KERNEL_OK")
</pallas_src>

<mosaic_0001>
module attributes {stable_mosaic.version = 11 : i64} {
  func.func @_crelu_kernel(%arg0: i32, %arg1: i32, %arg2: memref<1x36x128xbf16, #tpu.memory_space<vmem>>, %arg3: memref<16x36xbf16, #tpu.memory_space<vmem>>, %arg4: memref<16x1xf32, #tpu.memory_space<vmem>>, %arg5: memref<1x16x128xbf16, #tpu.memory_space<vmem>>) attributes {dimension_semantics = [#tpu.dimension_semantics<parallel>, #tpu.dimension_semantics<parallel>], iteration_bounds = array<i64: 2, 2>, scalar_prefetch = 0 : i64, scratch_operands = 0 : i64, tpu.core_type = #tpu.core_type<tc>, window_params = [{transform_indices = @transform_0, window_bounds = array<i64: 1, 36, 128>}, {pipeline_mode = #tpu.pipeline_mode<synchronous>, transform_indices = @transform_1, window_bounds = array<i64: 16, 36>}, {pipeline_mode = #tpu.pipeline_mode<synchronous>, transform_indices = @transform_2, window_bounds = array<i64: 16, 1>}, {transform_indices = @transform_3, window_bounds = array<i64: 1, 16, 128>}]} {
    %c0 = arith.constant 0 : index
    %c0_0 = arith.constant 0 : index
    %0 = vector.load %arg3[%c0, %c0_0] : memref<16x36xbf16, #tpu.memory_space<vmem>>, vector<16x36xbf16>
    %c0_1 = arith.constant 0 : index
    %c0_2 = arith.constant 0 : index
    %c0_3 = arith.constant 0 : index
    %1 = vector.load %arg2[%c0_1, %c0_2, %c0_3] : memref<1x36x128xbf16, #tpu.memory_space<vmem>>, vector<1x36x128xbf16>
    %2 = vector.shape_cast %1 : vector<1x36x128xbf16> to vector<36x128xbf16>
    %cst = arith.constant dense<0.000000e+00> : vector<16x128xf32>
    %3 = tpu.matmul %0, %2, %cst {dimension_numbers = #tpu.dot_dimension_numbers<[1], [0], [0], [1], [0, 0, 1, 1], [], []>} : vector<16x36xbf16>, vector<36x128xbf16>, vector<16x128xf32> -> vector<16x128xf32>
    %c0_4 = arith.constant 0 : index
    %c0_5 = arith.constant 0 : index
    %4 = vector.load %arg4[%c0_4, %c0_5] : memref<16x1xf32, #tpu.memory_space<vmem>>, vector<16x1xf32>
    %5 = vector.broadcast %4 : vector<16x1xf32> to vector<16x128xf32>
    %6 = arith.addf %3, %5 : vector<16x128xf32>
    %cst_6 = arith.constant 0.000000e+00 : f32
    %7 = vector.broadcast %cst_6 : f32 to vector<16x128xf32>
    %8 = arith.maximumf %6, %7 : vector<16x128xf32>
    %9 = arith.truncf %8 : vector<16x128xf32> to vector<16x128xbf16>
    %c0_7 = arith.constant 0 : index
    %c0_8 = arith.constant 0 : index
    %c0_9 = arith.constant 0 : index
    %10 = vector.load %arg5[%c0_7, %c0_8, %c0_9] : memref<1x16x128xbf16, #tpu.memory_space<vmem>>, vector<1x16x128xbf16>
    %11 = vector.shape_cast %10 : vector<1x16x128xbf16> to vector<16x128xbf16>
    %12 = vector.shape_cast %9 : vector<16x128xbf16> to vector<1x16x128xbf16>
    tpu.vector_store %arg5[%c0_7, %c0_8, %c0_9], %12 {strides = array<i32>} : memref<1x16x128xbf16, #tpu.memory_space<vmem>>, vector<1x16x128xbf16>,
    return
  }
  func.func @transform_0(%arg0: i32, %arg1: i32) -> (i32, i32, i32) {
    %c0_i32 = arith.constant 0 : i32
    %c0_i32_0 = arith.constant 0 : i32
    return %arg0, %c0_i32, %arg1 : i32, i32, i32
  }
  func.func @transform_1(%arg0: i32, %arg1: i32) -> (i32, i32) {
    %c0_i32 = arith.constant 0 : i32
    %c0_i32_0 = arith.constant 0 : i32
    %c0_i32_1 = arith.constant 0 : i32
    return %c0_i32, %c0_i32_0 : i32, i32
  }
  func.func @transform_2(%arg0: i32, %arg1: i32) -> (i32, i32) {
    %c0_i32 = arith.constant 0 : i32
    %c0_i32_0 = arith.constant 0 : i32
    %c0_i32_1 = arith.constant 0 : i32
    return %c0_i32, %c0_i32_0 : i32, i32
  }
  func.func @transform_3(%arg0: i32, %arg1: i32) -> (i32, i32, i32) {
    %c0_i32 = arith.constant 0 : i32
    %c0_i32_0 = arith.constant 0 : i32
    return %arg0, %c0_i32, %arg1 : i32, i32, i32
  }
}

</mosaic_0001>

<bundles_post_ra>
// kernel: crelu_forward.1
= control target key start
LH: loop header
LB: loop body
LE: loop exit
PB: predicated region body
PF: predicated region fallthrough
CT: control target
= control target key end

     0   :  { %s653_s12 = smov 0   ;;  %s655_s13 = smov 0   ;;  %s762_s0 = inlined_call_operand.vmem [shape: bf16[2,36,256], index: 0, kind: input, shape index: {}]   ;;  %s763_s1 = inlined_call_operand.vmem [shape: bf16[16,36], index: 1, kind: input, shape index: {}]   ;;  %s764_s2 = inlined_call_operand.vmem [shape: f32[16,1], index: 2, kind: input, shape index: {}]   ;;  %s765_s3 = inlined_call_operand.vmem [shape: bf16[2,16,256], index: 3, kind: output, shape index: {}]  }
   0x1   :  { %s657_s14 = smov 0   ;;  %s659_s15 = smov 0  }
   0x2   :  { %s661_s16 = smov 0   ;;  %s663_s17 = smov 0  }
   0x3   :  { %s665_s18 = smov 0  }
   0x4 LB: > { %s22_s19 = sadd.s32 1, %s620_s16  ;;  %s25_s20 = sadd.s32 1, %s624_s17  ;;  %s628_s18 = sphi %s665_s18, %s13_s18   ;;  %s624_s17 = sphi %s663_s17, %s772_s17   ;;  %s620_s16 = sphi %s661_s16, %s771_s16   ;;  %s616_s15 = sphi %s659_s15, %s770_s15   ;;  %s612_s14 = sphi %s657_s14, %s769_s14   ;;  %s608_s13 = sphi %s655_s13, %s768_s13   ;;  %s604_s12 = sphi %s653_s12, %s767_s12  }
   0x5   : > { %p23_p0 = scmp.ge.s32.totalorder %s22_s19, 2  ;;  %s467_s21 = sadd.s32 4294967295, %s628_s18  }
   0x6   : > { %p41_p1 = scmp.ne.s32.totalorder %s608_s13, %s604_s12  ;;  %p42_p2 = scmp.eq.s32.totalorder %s628_s18, 0 }
   0x7   : > { %s774_s19 = smov (%p23_p0, %s22_s19), 0  ;;  %s776_s20 = smov (!%p23_p0, %s25_s20), %s624_s17 }
   0x8   : > { %p27_p3 = scmp.ge.s32.totalorder %s776_s20, 2  ;;  %p115_p4 = scmp.eq.s32.totalorder %s467_s21, 3 }
   0x9   : > { %s30_s22 = ssub.s32 %s620_s16, %s774_s19  ;;  %p43_p5 = por %p42_p2, %p41_p1 }
   0xa   : > { %s778_s20 = smov (%p27_p3, %s776_s20), 0  ;;  %p701_p6 = por %p115_p4, %p41_p1 }
   0xb   : > { %s29_s24 = ssub.s32 %s624_s17, %s778_s20  ;;  %s34_s26 = sadd.s32 1, %s608_s13 }
   0xc   : > { %s31_s25 = sor.u32 %s30_s22, %s29_s24  ;;  %p470_p8 = scmp.ge.s32.totalorder %s628_s18, 4 }
   0xd   : > { %p32_p7 = scmp.eq.s32.totalorder %s31_s25, 0 }
   0xe   : > { %143 = sbr.rel (%p470_p8) target bundleno = 31 (0x1f), region = 24 }
   0xf   : > { %s709_s27 = scalar_select %p32_p7, %s608_s13, %s34_s26  }
  0x15   : > { %146 = sbr.rel (!%p43_p5) target bundleno = 31 (0x1f), region = 28  ;;  %s148_s28 = sand.u32 (%p43_p5), 1, %s608_s13  }
  0x16   : > { %s508_s29 = smul.u32 (%p43_p5), 10, %s624_s17 }
  0x17   : > { %s507_s30 = smul.u32 (%p43_p5), 20, %s148_s28 }
  0x18   : > { %s152_s4 = sadd.s32 (%p43_p5), %s620_s16, %s508_s29 }
  0x19   : > { %s471_s5 = sshll.u32 (%p43_p5), %s152_s4, 2  ;;  %s150_s9 = scalar_lea.vmem (%p43_p5), [#allocation2], %s507_s30 }
  0x1a   : > { %s154_s8 = scalar_lea.vmem (%p43_p5), %s762_s0, %s471_s5 }
  0x1b   : > { %v170_v0 = vld [vmem:[%s154_s8] sm:$0xf] (%p43_p5)  ;;  %v172_v1 = vld [vmem:[%s154_s8 + $0x8] sm:$0xf] (%p43_p5)  ;;  %v174_v2 = vld [vmem:[%s154_s8 + $0x10] sm:$0xf] (%p43_p5) }
  0x1c   : > { %171 = vst [vmem:[%s150_s9] sm:$0xf] %v170_v0  ;;  %173 = vst [vmem:[%s150_s9 + $0x4] sm:$0xf] %v172_v1  ;;  %v176_v3 = vld [vmem:[%s154_s8 + $0x18] sm:$0xf] }
  0x1d   : > { %175 = vst [vmem:[%s150_s9 + $0x8] sm:$0xf] %v174_v2  ;;  %v178_v4 = vld [vmem:[%s154_s8 + $0x20] sm:$0xf]  ;;  %177 = vst [vmem:[%s150_s9 + $0xc] sm:$0xf] %v176_v3 }
  0x1e   : > { %179 = vst [vmem:[%s150_s9 + $0x10] sm:$0xf] %v178_v4 }
  0x1f PF: > { %p472_p9 = scmp.ge.s32.totalorder %s628_s18, 1  ;;  %p211_p10 = scmp.lt.s32.totalorder %s628_s18, 5 }
  0x21   : > { %p212_p11 = pnand %p472_p9, %p211_p10 }
  0x22   : > { %s218_s10 = sand.u32 (!%p212_p11), 1, %s604_s12   ;;  %v630_v5 = vmov (!%p212_p11), 0.0   ;;  %vm631_vm0 = vmmov (!%p212_p11), 0   ;;  %v632_v6 = vmov (!%p212_p11), 0   ;;  %v248_v7 = vld [vmem:[%s764_s2] sm:$0xff] (!%p212_p11)  ;;  %v249_v8 = vld [vmem:[%s764_s2 + $0x8] sm:$0xff] (!%p212_p11) }
  0x23   : > { %215 = sbr.rel (%p212_p11) target bundleno = 280 (0x118), region = 69  ;;  %497 = vmatprep.subr.bf16.mxu0 (!%p212_p11), %v630_v5  ;;  %503 = vmatprep.mubr.msk.bf16.mxu0 (!%p212_p11), %vm631_vm0, %v630_v5  ;;  %vm284_vm1 = vcmask (!%p212_p11), 1041408   ;;  %v573_v13 = vld [vmem:[%s763_s1] sm:$0xff] (!%p212_p11)   ;;  %vm280_vm2 = vcmask (!%p212_p11), 293888   ;;  %s473_s30 = sshll.u32 (!%p212_p11), %s218_s10, 3 }
  0x24   : > { %s509_s11 = smul.u32 (!%p212_p11), 20, %s218_s10  ;;  %569 = vset.pattern.permute.xlu0 (!%p212_p11), %v632_v6  ;;  %s239_s4 = scalar_lea.vmem (!%p212_p11), [#allocation3], %s473_s30 }
  0x25   : > { %252 = vperm.xlu0 (!%p212_p11), %569, %v248_v7  }
  0x26   : > { %s220_s26 = scalar_lea.vmem (!%p212_p11), [#allocation2], %s509_s11 }
  0x27   : > { %v570_v9 = vld [vmem:[%s220_s26] sm:$0xff] (!%p212_p11)   ;;  %v571_v10 = vld [vmem:[%s220_s26 + $0x8] sm:$0xff] (!%p212_p11)   ;;  %v572_v11 = vld [vmem:[%s220_s26 + $0x10] ss:$0 sps:$4 sm:$0x33] (!%p212_p11)  }
  0x28   : > { %498 = vmatpush3.bf16.msra.mxu0 (!%p212_p11), %v570_v9  ;;  %v286_v12 = vsel (!%p212_p11), %vm284_vm1, %v572_v11, 0 }
  0x29   : > { %499 = vmatprep.subr.bf16.mxu0 (!%p212_p11), %v630_v5  ;;  %257 = vperm.xlu0 (!%p212_p11), %569, %v249_v8  }
  0x2a   : > { %s482_s5 = sshll.u32 (%p701_p6), %s616_s15, 2 }
  0x2b   : > { %s349_s6 = sadd.s32 (%p701_p6), %s612_s14, %s482_s5 }
  0x2c   : > { %500 = vmatpush3.bf16.msra.mxu0 %v571_v10  ;;  %s483_s7 = sshll.u32 (%p701_p6), %s349_s6, 2 }
  0x2d   : > { %501 = vmatprep.subr.bf16.mxu0 %v630_v5  ;;  %s351_s9 = scalar_lea.vmem (%p701_p6), %s765_s3, %s483_s7 }
  0x30   : > { %502 = vmatpush3.bf16.msra.mxu0 %v286_v12 }
  0x33   : > { %504 = vmatmul.mubr.msk.bf16.vlgmr.msra.gmra.mrb[0].mxu0 %vm280_vm2, %v573_v13 }
  0xa4   : > { %v253_v14 = vpop.permute.xlu0 %252 }
  0xa8   : > { %v258_v18 = vpop.permute.xlu0 %257 }
 0x106   : > { %v322_v15 = vpop.f32.mrb[0].mxu0 }
 0x107   : > { %v323_v16 = vadd.f32 %v322_v15, %v253_v14  ;;  %v505_v17 = vpop.f32.mrb[1].mxu0 }
 0x108   : > { %v325_v19 = vpop.f32.mrb[2].mxu0 }
 0x109   : > { %v326_v20 = vadd.f32 %v325_v19, %v258_v18  ;;  %v506_v21 = vpop.f32.mrb[3].mxu0  ;;  %v329_v22 = vmax.f32 %v323_v16, 0.0  ;;  %347 = sbr.rel (!%p701_p6) target bundleno = 280 (0x118), region = 77 }
 0x10b   : > { %v330_v23 = vmax.f32 %v326_v20, 0.0 }
 0x10d   : > { %v491_v24 = vpack.c.bf16 %v330_v23, %v329_v22 }
 0x10f   : > { %492 = vst [vmem:[%s239_s4] sm:$0xff] %v491_v24  }
 0x116   : > { %v367_v25 = vld [vmem:[%s239_s4] sm:$0xf]  ;;  %v369_v26 = vld [vmem:[%s239_s4 + $0x4] sm:$0xf] }
 0x117   : > { %368 = vst [vmem:[%s351_s9] sm:$0xf] %v367_v25  ;;  %370 = vst [vmem:[%s351_s9 + $0x8] sm:$0xf] %v369_v26 }
 0x118 PF: > { %s13_s18 = sadd.s32 1, %s628_s18   ;;  %s767_s12 = smov %s608_s13 }
 0x119   : > { %p10_p12 = scmp.ge.s32.totalorder %s13_s18, 6   ;;  %s768_s13 = smov %s709_s27 }
 0x11a   : > { %s769_s14 = smov %s620_s16  ;;  %s770_s15 = smov %s624_s17 }
 0x11b   : > { %s771_s16 = smov %s774_s19  ;;  %s772_s17 = smov %s778_s20 }
 0x11c   :  { %12 = sbr.rel (!%p10_p12) target bundleno = 4 (0x4), region = 149 }

</bundles_post_ra>
